<compile_context>
chip_gen: v7x
topology: tpu7x:2x2x1
jax: 0.10.0
libtpu: 0.0.40
codegen_flags: <defaults>
</compile_context>

<pallas_src>
import jax
import jax.numpy as jnp
from jax.experimental import pallas as pl
from jax.experimental.pallas import tpu as pltpu


_LANE = 128
_SUBLANE = 8
# Double-buffered VMEM block budget (bytes), conservative across v5e/v6e/v7x.
_VMEM_BLOCK_BUDGET = 20 * 1024 * 1024
# Scoped VMEM limit passed to Mosaic (raises v5e's 16 MiB default, no-op on
# v6e/v7x whose default scoped limit is already 32 MiB, < 64 MiB physical).
_VMEM_LIMIT_BYTES = 32 * 1024 * 1024


def _round_up(a, b):
    return ((a + b - 1) // b) * b


# ---------------------------------------------------------------------------
# Kernels (no in-kernel transposes; all matmuls accumulate in f32 on the MXU)
# ---------------------------------------------------------------------------

def _fused_mt_kernel(b_ref, x_ref, o_ref):
    """Small-M path: o[M, tn] = B @ x_tile.T via an NT contraction.

    b_ref: (M, Dx)   B = y @ W, resident across all grid steps
    x_ref: (tn, Dx)  tile of x rows
    o_ref: (M, tn)   transposed output tile -> lane axis is N (lane-dense)
    """
    o_ref[...] = jax.lax.dot_general(
        b_ref[...], x_ref[...],
        dimension_numbers=(((1,), (1,)), ((), ())),   # contract both on Dx
        preferred_element_type=jnp.float32,
    ).astype(o_ref.dtype)


def _fused_nm_kernel(x_ref, b_ref, o_ref):
    """Large-M fused path: o[tn, tm] = x_tile @ B_tile.T (NT contraction)."""
    o_ref[...] = jax.lax.dot_general(
        x_ref[...], b_ref[...],
        dimension_numbers=(((1,), (1,)), ((), ())),   # contract both on Dx
        preferred_element_type=jnp.float32,
    ).astype(o_ref.dtype)


def _two_dot_nm_kernel(x_ref, wt_ref, yt_ref, o_ref):
    """Two-matmul path, used only when Dy*(Dx+M) < Dx*M.

    Operands arrive pre-transposed from the wrapper, so this is two plain
    MXU matmuls with no in-kernel transpose.
      x_ref: (tn, Dx), wt_ref: (Dx, Dy), yt_ref: (Dy, tm), o_ref: (tn, tm)
    """
    z = jnp.dot(x_ref[...], wt_ref[...], preferred_element_type=jnp.float32)
    o_ref[...] = jnp.dot(
        z, yt_ref[...], preferred_element_type=jnp.float32).astype(o_ref.dtype)


# ---------------------------------------------------------------------------
# Tile selection (largest tile whose double-buffered f32 blocks fit the budget)
# ---------------------------------------------------------------------------

def _pick_block_n_small_m(dx, m):
    # Per grid step: x (t, dx), B (m, dx), out (m, t); all f32, double-buffered.
    for t in (2048, 1024, 512, 256, 128):
        if 2 * 4 * (t * dx + m * dx + m * t) <= _VMEM_BLOCK_BUDGET:
            return t
    # Dx so large even a 128-row tile blows the budget; would need a Dx
    # reduction grid axis with a VMEM accumulator (not needed for this module's
    # typical feature dims).
    return _LANE


def _pick_block_nm_large_m(dx, dy, two_dot):
    for t in (1024, 512, 256, 128):
        if two_dot:
            used = 2 * 4 * (t * dx + dx * dy + dy * t + t * t) + 4 * t * dy
        else:
            used = 2 * 4 * (2 * t * dx + t * t)
        if used <= _VMEM_BLOCK_BUDGET:
            return t, t
    return _LANE, _LANE


# ---------------------------------------------------------------------------
# Wrappers
# ---------------------------------------------------------------------------

def _forward_small_m(x, b, block_n):
    """scores.T = B @ x.T, tiled over x rows; output kept lane-dense in N."""
    n, dx = x.shape
    m = b.shape[0]

    cap = block_n if block_n is not None else _pick_block_n_small_m(dx, m)
    cap = max(_LANE, _round_up(cap, _LANE))

    n8 = _round_up(n, _SUBLANE)
    if n8 <= cap:
        tn, n_pad = n8, n8                      # single block (full extent)
    else:
        tn, n_pad = cap, _round_up(n, cap)      # tn multiple of 128
    if n_pad != n:
        x = jnp.pad(x, ((0, n_pad - n), (0, 0)))

    out_t = pl.pallas_call(
        _fused_mt_kernel,
        out_shape=jax.ShapeDtypeStruct((m, n_pad), jnp.float32),
        grid_spec=pltpu.PrefetchScalarGridSpec(
            num_scalar_prefetch=0,
            grid=(n_pad // tn,),
            in_specs=[
                pl.BlockSpec((m, dx), lambda i: (0, 0)),    # B (full, resident)
                pl.BlockSpec((tn, dx), lambda i: (i, 0)),   # x tile
            ],
            out_specs=pl.BlockSpec((m, tn), lambda i: (0, i)),
        ),
        compiler_params=pltpu.CompilerParams(
            dimension_semantics=("parallel",),
            vmem_limit_bytes=_VMEM_LIMIT_BYTES,
        ),
    )(b, x)
    # One cheap wrapper-side transpose (M is small) -> (N, M).
    return out_t[:, :n].T


def _forward_large_m_fused(x, b, block_n, block_m):
    """scores = x @ B.T, tiled over (N, M); output last dim already lane-dense."""
    n, dx = x.shape
    m = b.shape[0]

    tn0, tm0 = _pick_block_nm_large_m(dx, 0, False)
    tn_cap = max(_LANE, _round_up(block_n, _LANE)) if block_n is not None else tn0
    tm_cap = max(_LANE, _round_up(block_m, _LANE)) if block_m is not None else tm0

    n8 = _round_up(n, _SUBLANE)
    tn, n_pad = (n8, n8) if n8 <= tn_cap else (tn_cap, _round_up(n, tn_cap))
    m128 = _round_up(m, _LANE)
    tm, m_pad = (m128, m128) if m128 <= tm_cap else (tm_cap, _round_up(m, tm_cap))

    if n_pad != n:
        x = jnp.pad(x, ((0, n_pad - n), (0, 0)))
    if m_pad != m:
        b = jnp.pad(b, ((0, m_pad - m), (0, 0)))

    out = pl.pallas_call(
        _fused_nm_kernel,
        out_shape=jax.ShapeDtypeStruct((n_pad, m_pad), jnp.float32),
        grid_spec=pltpu.PrefetchScalarGridSpec(
            num_scalar_prefetch=0,
            grid=(n_pad // tn, m_pad // tm),
            in_specs=[
                pl.BlockSpec((tn, dx), lambda i, j: (i, 0)),   # x tile
                pl.BlockSpec((tm, dx), lambda i, j: (j, 0)),   # B tile
            ],
            out_specs=pl.BlockSpec((tn, tm), lambda i, j: (i, j)),
        ),
        compiler_params=pltpu.CompilerParams(
            dimension_semantics=("parallel", "parallel"),
            vmem_limit_bytes=_VMEM_LIMIT_BYTES,
        ),
    )(x, b)
    return out[:n, :m]


def _forward_large_m_two_dot(x, y, w, block_n, block_m):
    """scores = (x @ W.T) @ y.T with W, y pre-transposed in the wrapper."""
    n, dx = x.shape
    m, dy = y.shape

    tn0, tm0 = _pick_block_nm_large_m(dx, dy, True)
    tn_cap = max(_LANE, _round_up(block_n, _LANE)) if block_n is not None else tn0
    tm_cap = max(_LANE, _round_up(block_m, _LANE)) if block_m is not None else tm0

    n8 = _round_up(n, _SUBLANE)
    tn, n_pad = (n8, n8) if n8 <= tn_cap else (tn_cap, _round_up(n, tn_cap))
    m128 = _round_up(m, _LANE)
    tm, m_pad = (m128, m128) if m128 <= tm_cap else (tm_cap, _round_up(m, tm_cap))

    if n_pad != n:
        x = jnp.pad(x, ((0, n_pad - n), (0, 0)))
    if m_pad != m:
        y = jnp.pad(y, ((0, m_pad - m), (0, 0)))

    wt = w.T            # (Dx, Dy)  one-time wrapper transpose
    yt = y.T            # (Dy, m_pad)

    out = pl.pallas_call(
        _two_dot_nm_kernel,
        out_shape=jax.ShapeDtypeStruct((n_pad, m_pad), jnp.float32),
        grid_spec=pltpu.PrefetchScalarGridSpec(
            num_scalar_prefetch=0,
            grid=(n_pad // tn, m_pad // tm),
            in_specs=[
                pl.BlockSpec((tn, dx), lambda i, j: (i, 0)),   # x tile
                pl.BlockSpec((dx, dy), lambda i, j: (0, 0)),   # W.T (full)
                pl.BlockSpec((dy, tm), lambda i, j: (0, j)),   # y.T tile
            ],
            out_specs=pl.BlockSpec((tn, tm), lambda i, j: (i, j)),
        ),
        compiler_params=pltpu.CompilerParams(
            dimension_semantics=("parallel", "parallel"),
            vmem_limit_bytes=_VMEM_LIMIT_BYTES,
        ),
    )(x, wt, yt)
    return out[:n, :m]


def bilinear_critic(x, y, w, *, block_n=None, block_m=None):
    """Pallas TPU implementation of BiLinearCritic.forward.

    x: (N, Dx), y: (M, Dy), w: (Dy, Dx)  (nn.Linear weight, bias=False)
    returns (N, M) float32 scores = (x @ W.T) @ y.T
    """
    n, dx = x.shape
    m, dy = y.shape
    assert w.shape == (dy, dx), f"weight shape {w.shape} != {(dy, dx)}"

    x = x.astype(jnp.float32)
    y = y.astype(jnp.float32)
    w = w.astype(jnp.float32)

    # Keep the two-matmul chain only when it is FLOP-cheaper than the
    # re-associated single matmul per x tile.
    two_dot = dy * (dx + m) < dx * m

    if m < _LANE or not two_dot:
        # Re-associated form: scores = x @ (y @ W).T ; B computed once.
        b = jnp.dot(y, w, precision=jax.lax.Precision.HIGHEST)   # (M, Dx)
        if m < _LANE:
            return _forward_small_m(x, b, block_n)
        return _forward_large_m_fused(x, b, block_n, block_m)
    return _forward_large_m_two_dot(x, y, w, block_n, block_m)


if __name__ == "__main__":
    hi = jax.lax.Precision.HIGHEST

    # --- Primary check: module-consistent small shapes -----------------------
    N, M = 16, 8
    input_dim_x, input_dim_y = 32, 16

    key = jax.random.PRNGKey(0)
    kx, ky, kw = jax.random.split(key, 3)

    x = jax.random.normal(kx, (N, input_dim_x), dtype=jnp.float32)
    y = jax.random.normal(ky, (M, input_dim_y), dtype=jnp.float32)
    bound = 1.0 / (input_dim_x ** 0.5)
    w = jax.random.uniform(kw, (input_dim_y, input_dim_x), dtype=jnp.float32,
                           minval=-bound, maxval=bound)

    out = jax.block_until_ready(bilinear_critic(x, y, w))
    ref = jnp.dot(jnp.dot(x, w.T, precision=hi), y.T, precision=hi)
    assert out.shape == (N, M)
    assert jnp.allclose(out, ref, atol=1e-3, rtol=1e-3), \
        float(jnp.max(jnp.abs(out - ref)))

    # --- Secondary checks: exercise the large-M kernels (still tiny) ---------
    # (a) M = 128, Dy = 16 -> two-dot path (Dy*(Dx+M) < Dx*M), ragged N.
    k2 = jax.random.PRNGKey(1)
    ka, kb, kc = jax.random.split(k2, 3)
    x2 = jax.random.normal(ka, (20, 32), dtype=jnp.float32)
    y2 = jax.random.normal(kb, (128, 16), dtype=jnp.float32)
    w2 = jax.random.normal(kc, (16, 32), dtype=jnp.float32) * 0.1
    out2 = jax.block_until_ready(bilinear_critic(x2, y2, w2))
    ref2 = jnp.dot(jnp.dot(x2, w2.T, precision=hi), y2.T, precision=hi)
    assert jnp.allclose(out2, ref2, atol=1e-3, rtol=1e-3)

    # (b) M = 128, Dy = 64 -> fused (re-associated) tiled path.
    k3 = jax.random.PRNGKey(2)
    ka, kb, kc = jax.random.split(k3, 3)
    x3 = jax.random.normal(ka, (20, 32), dtype=jnp.float32)
    y3 = jax.random.normal(kb, (128, 64), dtype=jnp.float32)
    w3 = jax.random.normal(kc, (64, 32), dtype=jnp.float32) * 0.1
    out3 = jax.block_until_ready(bilinear_critic(x3, y3, w3))
    ref3 = jnp.dot(jnp.dot(x3, w3.T, precision=hi), y3.T, precision=hi)
    assert jnp.allclose(out3, ref3, atol=1e-3, rtol=1e-3)

    print("KERNEL_OK")
</pallas_src>

<mosaic_0001>
module attributes {stable_mosaic.version = 11 : i64} {
  func.func @_fused_mt_kernel(%arg0: i32, %arg1: memref<8x32xf32, #tpu.memory_space<vmem>>, %arg2: memref<16x32xf32, #tpu.memory_space<vmem>>, %arg3: memref<8x16xf32, #tpu.memory_space<vmem>>) attributes {dimension_semantics = [#tpu.dimension_semantics<parallel>], iteration_bounds = array<i64: 1>, scalar_prefetch = 0 : i64, scratch_operands = 0 : i64, tpu.core_type = #tpu.core_type<tc>, window_params = [{pipeline_mode = #tpu.pipeline_mode<synchronous>, transform_indices = @transform_0, window_bounds = array<i64: 8, 32>}, {transform_indices = @transform_1, window_bounds = array<i64: 16, 32>}, {transform_indices = @transform_2, window_bounds = array<i64: 8, 16>}]} {
    %c0 = arith.constant 0 : index
    %c0_0 = arith.constant 0 : index
    %0 = vector.load %arg1[%c0, %c0_0] : memref<8x32xf32, #tpu.memory_space<vmem>>, vector<8x32xf32>
    %c0_1 = arith.constant 0 : index
    %c0_2 = arith.constant 0 : index
    %1 = vector.load %arg2[%c0_1, %c0_2] : memref<16x32xf32, #tpu.memory_space<vmem>>, vector<16x32xf32>
    %cst = arith.constant dense<0.000000e+00> : vector<8x16xf32>
    %2 = tpu.matmul %0, %1, %cst {dimension_numbers = #tpu.dot_dimension_numbers<[1], [1], [0], [0], [0, 0, 1, 0], [], []>} : vector<8x32xf32>, vector<16x32xf32>, vector<8x16xf32> -> vector<8x16xf32>
    %c0_3 = arith.constant 0 : index
    %c0_4 = arith.constant 0 : index
    %3 = vector.load %arg3[%c0_3, %c0_4] : memref<8x16xf32, #tpu.memory_space<vmem>>, vector<8x16xf32>
    tpu.vector_store %arg3[%c0_3, %c0_4], %2 {strides = array<i32>} : memref<8x16xf32, #tpu.memory_space<vmem>>, vector<8x16xf32>,
    return
  }
  func.func @transform_0(%arg0: i32) -> (i32, i32) {
    %c0_i32 = arith.constant 0 : i32
    %c0_i32_0 = arith.constant 0 : i32
    %c0_i32_1 = arith.constant 0 : i32
    return %c0_i32, %c0_i32_0 : i32, i32
  }
  func.func @transform_1(%arg0: i32) -> (i32, i32) {
    %c0_i32 = arith.constant 0 : i32
    %c0_i32_0 = arith.constant 0 : i32
    return %arg0, %c0_i32 : i32, i32
  }
  func.func @transform_2(%arg0: i32) -> (i32, i32) {
    %c0_i32 = arith.constant 0 : i32
    %c0_i32_0 = arith.constant 0 : i32
    return %c0_i32, %arg0 : i32, i32
  }
}

</mosaic_0001>

<bundles_post_ra>
// kernel: tpu_custom_call.1
= control target key start
LH: loop header
LB: loop body
LE: loop exit
PB: predicated region body
PF: predicated region fallthrough
CT: control target
= control target key end

     0   :  { %7 = vsyncpa [#allocation3], 0  ;;  %s302_s0 = inlined_call_operand.hbm [shape: f32[8,32], index: 0, kind: input, shape index: {}]   ;;  %s303_s1 = inlined_call_operand.hbm [shape: f32[16,32], index: 1, kind: input, shape index: {}]   ;;  %s304_s2 = inlined_call_operand.hbm [shape: f32[8,16], index: 2, kind: output, shape index: {}]  }
   0x1   :  { %8 = vsyncpa [#allocation6], 0 }
   0x2   :  { %9 = vsyncpa [#allocation4], 0  ;;  %s236_s9 = smov [#allocation2]   ;;  %s237_s11 = smov [#allocation5]  }
   0x3   :  { %s16_s10 = sshll.u32 %s236_s9, 4  ;;  %s25_s12 = sshll.u32 %s237_s11, 4  ;;  %s17_s10 = int_to_ptr.vmem [resolvable:$true] %s16_s10  ;;  %s259_s12 = int_to_ptr.vmem [resolvable:$true] %s25_s12 }
   0x4   :  { %s164_s15 = scalar_lea.hbm %s302_s0, 128 }
   0x5   :  { %p165_p0 = scmp.ne.s32.totalorder %s302_s0, %s164_s15  ;;  %p168_p1 = scmp.lt.u32.totalorder %s164_s15, %s302_s0 }
   0x7   :  { %p170_p2 = pnand %p168_p1, %p165_p0 }
   0x9   :  { %173 = shalt.err (!%p170_p2)
}
   0xa   :  { %s174_s20 = scalar_lea.vmem %s17_s10, 128  ;;  %p179_p4 = scmp.lt.s32.totalorder %s17_s10, %s17_s10 }
   0xb   :  { %p175_p3 = scmp.ne.s32.totalorder %s17_s10, %s174_s20  ;;  %p180_p5 = scmp.lt.s32.totalorder %s174_s20, %s174_s20 }
   0xd   :  { %p181_p6 = por %p180_p5, %p179_p4 }
   0xf   :  { %p182_p7 = pnand %p181_p6, %p175_p3 }
  0x11   :  { %185 = shalt.err (!%p182_p7)
}
  0x12   :  { %19 = dma.hbm_to_vmem [thread:$0]  %s302_s0, 128, %s17_s10, [#allocation3]  }
  0x13   :  { %s186_s25 = scalar_lea.hbm %s303_s1, 256 }
  0x14   :  { %p187_p8 = scmp.ne.s32.totalorder %s303_s1, %s186_s25  ;;  %p190_p9 = scmp.lt.u32.totalorder %s186_s25, %s303_s1 }
  0x16   :  { %p192_p10 = pnand %p190_p9, %p187_p8 }
  0x18   :  { %195 = shalt.err (!%p192_p10)
}
  0x19   :  { %s196_s30 = scalar_lea.vmem %s259_s12, 256  ;;  %p201_p12 = scmp.lt.s32.totalorder %s259_s12, %s259_s12 }
  0x1a   :  { %p197_p11 = scmp.ne.s32.totalorder %s259_s12, %s196_s30  ;;  %p202_p13 = scmp.lt.s32.totalorder %s196_s30, %s196_s30 }
  0x1c   :  { %p203_p0 = por %p202_p13, %p201_p12 }
  0x1e   :  { %p204_p1 = pnand %p203_p0, %p197_p11 }
  0x20   :  { %207 = shalt.err (!%p204_p1)
}
  0x21   :  { %s238_s0 = smov 128   ;;  %s239_s3 = smov 8  }
  0x22   :  { %31 = dma.hbm_to_vmem [thread:$0]  %s303_s1, 256, %s259_s12, [#allocation6], %s238_s0, %s238_s0, %s239_s3  }
  0x23   :  { %230 = dma.done.wait [#allocation3], 128  }
  0x24   :  { %231 = vsyncadd [#allocation3], 4294967168 }
  0x25   :  { %232 = dma.done.wait [#allocation6], 256  }
  0x26   :  { %233 = vsyncadd [#allocation6], 4294967040  ;;  %v240_v0 = vmov 0.0|0.0   ;;  %vm241_vm0 = vmmov 0   ;;  %v242_v1 = vmov 0.0   ;;  %vm41_vm1 = vcmask 261120  }
  0x27   :  { %152 = vmatprep.subr.bf16.mxu0 %v240_v0  ;;  %149 = vmatprep.mubr.msk.f32.mxu0 %vm241_vm0, %v242_v1  ;;  %v39_v2 = vld [vmem:[#allocation5] sm:$0xff]  ;;  %v40_v3 = vld [vmem:[#allocation5 + $0x8] sm:$0xff]  ;;  %vm154_vm2 = vmpackc.low %vm41_vm1, %vm41_vm1  ;;  %s243_s6 = smov [#allocation7]   ;;  %vm121_vm3 = vcmask 130048  }
  0x28   :  { %v153_v4 = vpack.c.bf16 %v40_v3, %v39_v2  ;;  %v38_v5 = vld [vmem:[#allocation2] sm:$0xff]  ;;  %s129_s7 = sshll.u32 %s243_s6, 4  ;;  %s130_s7 = int_to_ptr.vmem [resolvable:$true] %s129_s7 }
  0x29   :  { %s208_s1 = scalar_lea.vmem %s130_s7, 128  ;;  %p213_p3 = scmp.lt.s32.totalorder %s130_s7, %s130_s7 }
  0x2a   :  { %155 = vmatpush3.bf16.xpose.msk.msra.mxu0 %vm154_vm2, %v153_v4  ;;  %p209_p2 = scmp.ne.s32.totalorder %s130_s7, %s208_s1  ;;  %p214_p4 = scmp.lt.s32.totalorder %s208_s1, %s208_s1 }
  0x2c   :  { %p215_p5 = por %p214_p4, %p213_p3 }
  0x2e   :  { %p216_p6 = pnand %p215_p5, %p209_p2 }
  0x31   :  { %150 = vmatmul.mubr.msk.f32.vlgmr.msra.gmra.mrb[0].mxu0 %vm41_vm1, %v38_v5 }
 0x104   :  { %v117_v6 = vpop.f32.mrb[0].mxu0 }
 0x105   :  { %v151_v7 = vpop.f32.mrb[1].mxu0  ;;  %122 = vst.msk [vmem:[#allocation7] sm:$0xff] %vm121_vm3, %v117_v6 }
 0x106   :  { %219 = shalt.err (!%p216_p6)
}
 0x107   :  { %s220_s10 = scalar_lea.hbm %s304_s2, 128 }
 0x108   :  { %p221_p7 = scmp.ne.s32.totalorder %s304_s2, %s220_s10  ;;  %p224_p8 = scmp.lt.u32.totalorder %s220_s10, %s304_s2 }
 0x10a   :  { %p226_p9 = pnand %p224_p8, %p221_p7 }
 0x10c   :  { %229 = shalt.err (!%p226_p9)
}
 0x10d   :  { %132 = dma.vmem_to_hbm [thread:$0]  %s130_s7, 128, %s304_s2, [#allocation4]  }
 0x10e   :  { %234 = dma.done.wait [#allocation4], 128  }
 0x10f   :  { %235 = vsyncadd [#allocation4], 4294967168 }
 0x110   :  { %136 = vsyncpa [#allocation3], 1 }
 0x111   :  { %137 = vsyncpa [#allocation6], 1 }
 0x112   :  { %138 = vsyncpa [#allocation4], 1 }

</bundles_post_ra>
